<compile_context>
chip_gen: v5e
topology: v5e:2x2
jax: 0.10.0
libtpu: 0.0.40
codegen_flags: <defaults>
</compile_context>

<pallas_src>
import math

import jax
import jax.numpy as jnp
import numpy as np
from jax import lax
from jax.experimental import pallas as pl
from jax.experimental.pallas import tpu as pltpu


# --------------------------------------------------------------------------
# Pallas kernel: 3x3 conv as 3 block-Toeplitz matmuls, lane-dense in/out.
# --------------------------------------------------------------------------
def _conv3x3_kernel(x_ref, w_ref, b_ref, o_ref):
    # x_ref: (1, H+2, Kp)      padded input rows, (W+2)*Cin folded on lanes
    # w_ref: (3, Kp, W*Cout)   per-dy block-Toeplitz weights
    # b_ref: (1, W*Cout)       bias tiled across W
    # o_ref: (1, H, W*Cout)    lane-dense output
    H = o_ref.shape[1]
    acc = jnp.zeros((H, o_ref.shape[2]), dtype=jnp.float32)
    for dy in range(3):  # static -> fully unrolled, 3 MXU pushes total
        acc = acc + jnp.dot(x_ref[0, dy:dy + H, :], w_ref[dy],
                            preferred_element_type=jnp.float32)
    acc = acc + b_ref[...]
    o_ref[0] = acc.astype(o_ref.dtype)


def _toeplitz_weight(w_hwio, W, k_pad):
    """Build per-dy block-Toeplitz matrices T: (3, k_pad, W*Cout).

    T[dy, xp*Cin + ci, x*Cout + co] = w_hwio[dy, xp - x, ci, co] for
    xp - x in {0,1,2} (xp indexes the width-padded input), else 0.
    """
    _, _, Cin, Cout = w_hwio.shape
    Wp = W + 2
    T = jnp.zeros((3, Wp, Cin, W, Cout), dtype=w_hwio.dtype)
    for dx in range(3):
        band = jnp.eye(Wp, W, k=-dx, dtype=w_hwio.dtype)            # (Wp, W)
        T = T + (band[None, :, None, :, None] *
                 w_hwio[:, dx][:, None, :, None, :])                # (3,Wp,Cin,W,Cout)
    T = T.reshape(3, Wp * Cin, W * Cout)
    if k_pad > Wp * Cin:
        T = jnp.pad(T, ((0, 0), (0, k_pad - Wp * Cin), (0, 0)))
    return T


def conv3x3_lane_dense(x_nhwc, w_oihw, b):
    """3x3, stride 1, pad 1 conv. x: (N,H,W,Cin) f32, w: (O,I,3,3), b: (O,)."""
    N, H, W, Cin = x_nhwc.shape
    Cout = w_oihw.shape[0]
    Wp = W + 2
    K = Wp * Cin
    Kp = ((K + 127) // 128) * 128          # lane-align the contraction dim
    WC = W * Cout                          # lane-dense output width

    # Spatial halo pad + fold (W+2, Cin) onto the lane axis (glue, tiny).
    xpad = jnp.pad(x_nhwc, ((0, 0), (1, 1), (1, 1), (0, 0)))
    xrow = xpad.reshape(N, H + 2, K)
    if Kp > K:
        xrow = jnp.pad(xrow, ((0, 0), (0, 0), (0, Kp - K)))

    # OIHW -> HWIO -> block-Toeplitz; bias tiled to one lane-dense row.
    w_hwio = jnp.transpose(w_oihw, (2, 3, 1, 0))
    T = _toeplitz_weight(w_hwio, W, Kp)
    b_row = jnp.tile(b, W).reshape(1, WC)

    flops = 2 * N * 3 * H * Kp * WC
    bytes_accessed = 4 * (N * (H + 2) * Kp + 3 * Kp * WC + N * H * WC + WC)

    out = pl.pallas_call(
        _conv3x3_kernel,
        out_shape=jax.ShapeDtypeStruct((N, H, WC), x_nhwc.dtype),
        grid_spec=pltpu.PrefetchScalarGridSpec(
            num_scalar_prefetch=0,
            grid=(N,),
            in_specs=[
                pl.BlockSpec((1, H + 2, Kp), lambda n: (n, 0, 0)),
                pl.BlockSpec((3, Kp, WC), lambda n: (0, 0, 0)),
                pl.BlockSpec((1, WC), lambda n: (0, 0)),
            ],
            out_specs=pl.BlockSpec((1, H, WC), lambda n: (n, 0, 0)),
        ),
        compiler_params=pltpu.CompilerParams(
            dimension_semantics=("parallel",)),
        cost_estimate=pl.CostEstimate(
            flops=flops, transcendentals=0, bytes_accessed=bytes_accessed),
    )(xrow, T, b_row)

    return out.reshape(N, H, W, Cout)


# --------------------------------------------------------------------------
# PixelShuffle (NHWC layout plumbing) and module glue.
# --------------------------------------------------------------------------
def pixel_shuffle_nhwc(x, r):
    """torch.nn.PixelShuffle semantics, NHWC layout (channel = co*r*r+ry*r+rx)."""
    N, H, W, C = x.shape
    Co = C // (r * r)
    x = x.reshape(N, H, W, Co, r, r)
    x = jnp.transpose(x, (0, 1, 4, 2, 5, 3))   # (N, H, ry, W, rx, Co)
    return x.reshape(N, H * r, W * r, Co)


def pixel_shuffle_nchw(x, r):
    """torch.nn.PixelShuffle semantics on NCHW input (reference path only)."""
    N, C, H, W = x.shape
    Co = C // (r * r)
    x = x.reshape(N, Co, r, r, H, W)
    x = jnp.transpose(x, (0, 1, 4, 2, 5, 3))
    return x.reshape(N, Co, H * r, W * r)


def make_upsample_params(key, scale, num_feat):
    """Deterministic synthetic params, one (weight, bias) per conv stage."""
    if scale & (scale - 1) == 0:
        n_stages, r = int(math.log(scale, 2)), 2
    elif scale == 3:
        n_stages, r = 1, 3
    else:
        raise ValueError(f"scale {scale} not supported")
    params = []
    for _ in range(n_stages):
        key, kw, kb = jax.random.split(key, 3)
        out_ch = (r * r) * num_feat
        fan_in = num_feat * 9
        bound = 1.0 / math.sqrt(fan_in)
        w = jax.random.uniform(kw, (out_ch, num_feat, 3, 3),
                               jnp.float32, -bound, bound)
        b = jax.random.uniform(kb, (out_ch,), jnp.float32, -bound, bound)
        params.append((w, b))
    return params, r


def upsample_forward(x_nchw, params, r):
    # Single NCHW->NHWC transpose at entry; stay NHWC across all stages.
    x = jnp.transpose(x_nchw, (0, 2, 3, 1))
    for w, b in params:
        x = conv3x3_lane_dense(x, w, b)
        x = pixel_shuffle_nhwc(x, r)
    # Single NHWC->NCHW transpose at exit (matches PyTorch layout).
    return jnp.transpose(x, (0, 3, 1, 2))


# ---- pure-JAX reference (lax.conv, NCHW) for correctness checking ----
def upsample_reference(x, params, r):
    for w, b in params:
        x = lax.conv_general_dilated(
            x, w, window_strides=(1, 1), padding=((1, 1), (1, 1)),
            dimension_numbers=("NCHW", "OIHW", "NCHW"))
        x = x + b[None, :, None, None]
        x = pixel_shuffle_nchw(x, r)
    return x


if __name__ == "__main__":
    scale = 4        # 2^n -> two (conv + PixelShuffle(2)) stages
    num_feat = 4
    key = jax.random.PRNGKey(0)
    key, kx = jax.random.split(key)
    x = jax.random.normal(kx, (2, num_feat, 16, 16), jnp.float32)  # NCHW

    params, r = make_upsample_params(key, scale, num_feat)

    out = jax.block_until_ready(upsample_forward(x, params, r))
    ref = jax.block_until_ready(upsample_reference(x, params, r))

    assert out.shape == (2, num_feat, 16 * scale, 16 * scale), out.shape
    np.testing.assert_allclose(np.asarray(out), np.asarray(ref),
                               rtol=1e-5, atol=1e-5)
    print("KERNEL_OK")
</pallas_src>

<mosaic_0001>
module attributes {stable_mosaic.version = 11 : i64} {
  func.func @_conv3x3_kernel(%arg0: i32, %arg1: memref<1x18x128xf32, #tpu.memory_space<vmem>>, %arg2: memref<3x128x256xf32, #tpu.memory_space<vmem>>, %arg3: memref<1x256xf32, #tpu.memory_space<vmem>>, %arg4: memref<1x16x256xf32, #tpu.memory_space<vmem>>) attributes {dimension_semantics = [#tpu.dimension_semantics<parallel>], iteration_bounds = array<i64: 2>, scalar_prefetch = 0 : i64, scratch_operands = 0 : i64, tpu.core_type = #tpu.core_type<tc>, window_params = [{transform_indices = @transform_0, window_bounds = array<i64: 1, 18, 128>}, {pipeline_mode = #tpu.pipeline_mode<synchronous>, transform_indices = @transform_1, window_bounds = array<i64: 3, 128, 256>}, {pipeline_mode = #tpu.pipeline_mode<synchronous>, transform_indices = @transform_2, window_bounds = array<i64: 1, 256>}, {transform_indices = @transform_3, window_bounds = array<i64: 1, 16, 256>}]} {
    %cst = arith.constant 0.000000e+00 : f32
    %0 = vector.broadcast %cst : f32 to vector<16x256xf32>
    %c0 = arith.constant 0 : index
    %c0_0 = arith.constant 0 : index
    %c0_1 = arith.constant 0 : index
    %1 = vector.load %arg1[%c0, %c0_0, %c0_1] : memref<1x18x128xf32, #tpu.memory_space<vmem>>, vector<1x16x128xf32>
    %2 = vector.shape_cast %1 : vector<1x16x128xf32> to vector<16x128xf32>
    %c0_2 = arith.constant 0 : index
    %c0_3 = arith.constant 0 : index
    %c0_4 = arith.constant 0 : index
    %3 = vector.load %arg2[%c0_2, %c0_3, %c0_4] : memref<3x128x256xf32, #tpu.memory_space<vmem>>, vector<1x128x256xf32>
    %4 = vector.shape_cast %3 : vector<1x128x256xf32> to vector<128x256xf32>
    %cst_5 = arith.constant dense<0.000000e+00> : vector<16x256xf32>
    %5 = tpu.matmul %2, %4, %cst_5 {dimension_numbers = #tpu.dot_dimension_numbers<[1], [0], [0], [1], [0, 0, 1, 1], [], []>} : vector<16x128xf32>, vector<128x256xf32>, vector<16x256xf32> -> vector<16x256xf32>
    %6 = arith.addf %0, %5 : vector<16x256xf32>
    %c0_6 = arith.constant 0 : index
    %c1 = arith.constant 1 : index
    %c0_7 = arith.constant 0 : index
    %7 = vector.load %arg1[%c0_6, %c1, %c0_7] : memref<1x18x128xf32, #tpu.memory_space<vmem>>, vector<1x16x128xf32>
    %8 = vector.shape_cast %7 : vector<1x16x128xf32> to vector<16x128xf32>
    %c1_8 = arith.constant 1 : index
    %c0_9 = arith.constant 0 : index
    %c0_10 = arith.constant 0 : index
    %9 = vector.load %arg2[%c1_8, %c0_9, %c0_10] : memref<3x128x256xf32, #tpu.memory_space<vmem>>, vector<1x128x256xf32>
    %10 = vector.shape_cast %9 : vector<1x128x256xf32> to vector<128x256xf32>
    %cst_11 = arith.constant dense<0.000000e+00> : vector<16x256xf32>
    %11 = tpu.matmul %8, %10, %cst_11 {dimension_numbers = #tpu.dot_dimension_numbers<[1], [0], [0], [1], [0, 0, 1, 1], [], []>} : vector<16x128xf32>, vector<128x256xf32>, vector<16x256xf32> -> vector<16x256xf32>
    %12 = arith.addf %6, %11 : vector<16x256xf32>
    %c0_12 = arith.constant 0 : index
    %c2 = arith.constant 2 : index
    %c0_13 = arith.constant 0 : index
    %13 = vector.load %arg1[%c0_12, %c2, %c0_13] : memref<1x18x128xf32, #tpu.memory_space<vmem>>, vector<1x16x128xf32>
    %14 = vector.shape_cast %13 : vector<1x16x128xf32> to vector<16x128xf32>
    %c2_14 = arith.constant 2 : index
    %c0_15 = arith.constant 0 : index
    %c0_16 = arith.constant 0 : index
    %15 = vector.load %arg2[%c2_14, %c0_15, %c0_16] : memref<3x128x256xf32, #tpu.memory_space<vmem>>, vector<1x128x256xf32>
    %16 = vector.shape_cast %15 : vector<1x128x256xf32> to vector<128x256xf32>
    %cst_17 = arith.constant dense<0.000000e+00> : vector<16x256xf32>
    %17 = tpu.matmul %14, %16, %cst_17 {dimension_numbers = #tpu.dot_dimension_numbers<[1], [0], [0], [1], [0, 0, 1, 1], [], []>} : vector<16x128xf32>, vector<128x256xf32>, vector<16x256xf32> -> vector<16x256xf32>
    %18 = arith.addf %12, %17 : vector<16x256xf32>
    %c0_18 = arith.constant 0 : index
    %c0_19 = arith.constant 0 : index
    %19 = vector.load %arg3[%c0_18, %c0_19] : memref<1x256xf32, #tpu.memory_space<vmem>>, vector<1x256xf32>
    %20 = vector.broadcast %19 : vector<1x256xf32> to vector<16x256xf32>
    %21 = arith.addf %18, %20 : vector<16x256xf32>
    %c0_20 = arith.constant 0 : index
    %c0_21 = arith.constant 0 : index
    %c0_22 = arith.constant 0 : index
    %22 = vector.load %arg4[%c0_20, %c0_21, %c0_22] : memref<1x16x256xf32, #tpu.memory_space<vmem>>, vector<1x16x256xf32>
    %23 = vector.shape_cast %22 : vector<1x16x256xf32> to vector<16x256xf32>
    %24 = vector.shape_cast %21 : vector<16x256xf32> to vector<1x16x256xf32>
    tpu.vector_store %arg4[%c0_20, %c0_21, %c0_22], %24 {strides = array<i32>} : memref<1x16x256xf32, #tpu.memory_space<vmem>>, vector<1x16x256xf32>,
    return
  }
  func.func @transform_0(%arg0: i32) -> (i32, i32, i32) {
    %c0_i32 = arith.constant 0 : i32
    %c0_i32_0 = arith.constant 0 : i32
    %c0_i32_1 = arith.constant 0 : i32
    return %arg0, %c0_i32, %c0_i32_0 : i32, i32, i32
  }
  func.func @transform_1(%arg0: i32) -> (i32, i32, i32) {
    %c0_i32 = arith.constant 0 : i32
    %c0_i32_0 = arith.constant 0 : i32
    %c0_i32_1 = arith.constant 0 : i32
    %c0_i32_2 = arith.constant 0 : i32
    return %c0_i32, %c0_i32_0, %c0_i32_1 : i32, i32, i32
  }
  func.func @transform_2(%arg0: i32) -> (i32, i32) {
    %c0_i32 = arith.constant 0 : i32
    %c0_i32_0 = arith.constant 0 : i32
    %c0_i32_1 = arith.constant 0 : i32
    return %c0_i32, %c0_i32_0 : i32, i32
  }
  func.func @transform_3(%arg0: i32) -> (i32, i32, i32) {
    %c0_i32 = arith.constant 0 : i32
    %c0_i32_0 = arith.constant 0 : i32
    %c0_i32_1 = arith.constant 0 : i32
    return %arg0, %c0_i32, %c0_i32_0 : i32, i32, i32
  }
}

</mosaic_0001>

<bundles_post_ra>
// kernel: tpu_custom_call.1
= control target key start
LH: loop header
LB: loop body
LE: loop exit
PB: predicated region body
PF: predicated region fallthrough
CT: control target
= control target key end

     0   :  { %8 = vsyncpa [#allocation3], 0  ;;  %s870_s0 = inlined_call_operand.vmem [shape: f32[2,18,128], index: 0, kind: input, shape index: {}]   ;;  %s871_s1 = inlined_call_operand.hbm [shape: f32[3,128,256], index: 1, kind: input, shape index: {}]   ;;  %s872_s2 = inlined_call_operand.vmem [shape: f32[1,256], index: 2, kind: input, shape index: {}]   ;;  %s873_s3 = inlined_call_operand.hbm [shape: f32[2,16,256], index: 3, kind: output, shape index: {}]  }
   0x1   :  { %9 = vsyncpa [#allocation4], 0 }
   0x2   :  { %11 = vsyncpa [#allocation4 + $0x1], 0  ;;  %s760_s12 = smov 0   ;;  %s762_s13 = smov 0  }
   0x3   :  { %s764_s14 = smov 0   ;;  %s766_s15 = smov 0  }
   0x4 LB: > { %s781_s16 = sadd.s32 4294967295, %s733_s15   ;;  %s536_s17 = sadd.s32 4294967294, %s733_s15   ;;  %s733_s15 = sphi %s766_s15, %s879_s15   ;;  %s729_s14 = sphi %s764_s14, %s878_s14   ;;  %s725_s13 = sphi %s762_s13, %s877_s13   ;;  %s721_s12 = sphi %s760_s12, %s876_s12  }
   0x5   : > { %s785_s18 = sadd.s32 1, %s733_s15   ;;  %s92_s19 = sadd.s32 1, %s729_s14 }
   0x6   : > { %s89_s20 = ssub.s32 %s733_s15, %s785_s18  ;;  %p102_p0 = scmp.ne.s32.totalorder %s729_s14, %s725_s13 }
   0x7   : > { %p90_p1 = scmp.eq.s32.totalorder %s89_s20, 0  ;;  %p103_p2 = scmp.eq.s32.totalorder %s781_s16, 1 }
   0x8   : > { %p108_p3 = scmp.ne.s32.totalorder %s725_s13, %s721_s12  ;;  %p109_p4 = scmp.eq.s32.totalorder %s536_s17, 1 }
   0x9   : > { %s796_s21 = scalar_select %p90_p1, %s729_s14, %s92_s19  }
   0xa   : > { %p798_p5 = por %p103_p2, %p102_p0  ;;  %p802_p6 = por %p109_p4, %p108_p3 }
   0xb   : > { %p537_p7 = scmp.ge.s32.totalorder %s733_s15, 1  ;;  %p116_p8 = scmp.lt.s32.totalorder %s733_s15, 3 }
   0xc   : > { %p597_p9 = scmp.eq.s32.totalorder %s781_s16, 0  ;;  %s127_s26 = sshll.u32 %s871_s1, 4  ;;  %s128_s26 = int_to_ptr.hbm [resolvable:$true] %s127_s26 }
   0xd   : > { %p117_p10 = pnand %p537_p7, %p116_p8  ;;  %s735_s27 = smov [#allocation2]  }
   0xe   : > { %s129_s28 = sshll.u32 %s735_s27, 4  ;;  %s736_s29 = smov 256   ;;  %s130_s28 = int_to_ptr.vmem [resolvable:$true] %s129_s28 }
   0xf   : > { %p589_p11 = pneg %p117_p10  ;;  %s737_s30 = smov 16  }
  0x10   : > { %156 = sbr.rel (%p117_p10) target bundleno = 232 (0xe8), region = 32 }
  0x11   : > { %p590_p12 = pnand %p597_p9, %p589_p11 }
  0x13   : > { %592 = dma.hbm_to_vmem [thread:$0]  (!%p590_p12), %s128_s26, 12288, %s130_s28, [#allocation3], %s736_s29, %s736_s29, %s737_s30  }
  0x15   : > { %712 = dma.done.wait (%p597_p9), [#allocation3], 12288  }
  0x16   : > { %714 = vsyncadd (%p597_p9), [#allocation3], 4294955008  ;;  %v253_v0 = vld [vmem:[#allocation2 + $0x1f0] sm:$0xff]  ;;  %v254_v1 = vld [vmem:[#allocation2 + $0x1f8] sm:$0xff]  ;;  %p181_p13 = scmp.lt.s32.totalorder %s781_s16, 1  ;;  %s178_s9 = sand.u32 1, %s725_s13  }
  0x17   : > { %v218_v2 = vld [vmem:[#allocation2 + $0xf0] sm:$0xff]  ;;  %255 = vmatpush.msra.mxu0 %v253_v0  ;;  %278 = vmatpush.msra.mxu1 %v254_v1  ;;  %v219_v3 = vld [vmem:[#allocation2 + $0xf8] sm:$0xff]  ;;  %v251_v4 = vld [vmem:[#allocation2 + $0x1e0] sm:$0xff]  ;;  %s542_s17 = sshll.u32 %s178_s9, 5  ;;  %s549_s19 = sshll.u32 %s781_s16, 5 }
  0x18   : > { %v252_v5 = vld [vmem:[#allocation2 + $0x1e8] sm:$0xff]  ;;  %301 = vmatpush.msra.mxu2 %v218_v2  ;;  %324 = vmatpush.msra.mxu3 %v219_v3  ;;  %v216_v6 = vld [vmem:[#allocation2 + $0xe0] sm:$0xff]  ;;  %v249_v8 = vld [vmem:[#allocation2 + $0x1d0] sm:$0xff]  ;;  %s182_s4 = scalar_select %p181_p13, %s781_s16, 1 }
  0x19   : > { %v217_v7 = vld [vmem:[#allocation2 + $0xe8] sm:$0xff]  ;;  %256 = vmatpush.msra.mxu0 %v251_v4  ;;  %279 = vmatpush.msra.mxu1 %v252_v5  ;;  %v250_v9 = vld [vmem:[#allocation2 + $0x1d8] sm:$0xff]  ;;  %v214_v10 = vld [vmem:[#allocation2 + $0xd0] sm:$0xff]  ;;  %s458_s25 = scalar_lea.hbm %s873_s3, %s549_s19  ;;  %s180_s26 = scalar_lea.vmem [#allocation5], %s542_s17 }
  0x1a   : > { %v215_v11 = vld [vmem:[#allocation2 + $0xd8] sm:$0xff]  ;;  %302 = vmatpush.msra.mxu2 %v216_v6  ;;  %325 = vmatpush.msra.mxu3 %v217_v7  ;;  %v247_v12 = vld [vmem:[#allocation2 + $0x1c0] sm:$0xff]  ;;  %v248_v13 = vld [vmem:[#allocation2 + $0x1c8] sm:$0xff]  ;;  %s582_s5 = smul.u32 24, %s182_s4  ;;  %s459_s27 = sshll.u32 %s180_s26, 4  ;;  %s460_s27 = int_to_ptr.vmem [resolvable:$true] %s459_s27 }
  0x1b   : > { %257 = vmatpush.msra.mxu0 %v249_v8  ;;  %280 = vmatpush.msra.mxu1 %v250_v9  ;;  %v212_v14 = vld [vmem:[#allocation2 + $0xc0] sm:$0xff]  ;;  %v213_v15 = vld [vmem:[#allocation2 + $0xc8] sm:$0xff]  ;;  %v245_v16 = vld [vmem:[#allocation2 + $0x1b0] sm:$0xff]  ;;  %s461_s28 = sshll.u32 %s458_s25, 4  ;;  %s447_s16 = scalar_lea.sflag [#allocation4], %s178_s9  ;;  %s462_s28 = int_to_ptr.hbm [resolvable:$true] %s461_s28 }
  0x1c   : > { %303 = vmatpush.msra.mxu2 %v214_v10  ;;  %326 = vmatpush.msra.mxu3 %v215_v11  ;;  %v246_v17 = vld [vmem:[#allocation2 + $0x1b8] sm:$0xff]  ;;  %v210_v18 = vld [vmem:[#allocation2 + $0xb0] sm:$0xff]  ;;  %v243_v20 = vld [vmem:[#allocation2 + $0x1a0] sm:$0xff]  ;;  %s823_s8 = scalar_lea.vmem %s870_s0, %s582_s5  ;;  %s681_s29 = sshra.s32 %s462_s28, 4  ;;  %s682_s29 = int_to_ptr.hbm [resolvable:$true] %s681_s29 }
  0x1d   : > { %258 = vmatpush.msra.mxu0 %v247_v12  ;;  %281 = vmatpush.msra.mxu1 %v248_v13  ;;  %v211_v19 = vld [vmem:[#allocation2 + $0xb8] sm:$0xff]  ;;  %v244_v21 = vld [vmem:[#allocation2 + $0x1a8] sm:$0xff]  ;;  %v208_v22 = vld [vmem:[#allocation2 + $0xa0] sm:$0xff]  ;;  %s683_s30 = scalar_lea.hbm %s682_s29, 32  ;;  %s687_s6 = scalar_lea.hbm %s873_s3, 64 }
  0x1e   : > { %304 = vmatpush.msra.mxu2 %v212_v14  ;;  %327 = vmatpush.msra.mxu3 %v213_v15  ;;  %v209_v23 = vld [vmem:[#allocation2 + $0xa8] sm:$0xff]  ;;  %v241_v24 = vld [vmem:[#allocation2 + $0x190] sm:$0xff]  ;;  %v242_v25 = vld [vmem:[#allocation2 + $0x198] sm:$0xff]  ;;  %p684_p0 = scmp.ne.s32.totalorder %s682_s29, %s683_s30  ;;  %p688_p3 = scmp.lt.s32.totalorder %s682_s29, %s873_s3 }
  0x1f   : > { %259 = vmatpush.msra.mxu0 %v245_v16  ;;  %282 = vmatpush.msra.mxu1 %v246_v17  ;;  %v206_v26 = vld [vmem:[#allocation2 + $0x90] sm:$0xff]  ;;  %v207_v27 = vld [vmem:[#allocation2 + $0x98] sm:$0xff]  ;;  %v239_v28 = vld [vmem:[#allocation2 + $0x180] sm:$0xff]  ;;  %p689_p4 = scmp.lt.s32.totalorder %s687_s6, %s683_s30 }
  0x20   : > { %305 = vmatpush.msra.mxu2 %v210_v18  ;;  %328 = vmatpush.msra.mxu3 %v211_v19  ;;  %v240_v29 = vld [vmem:[#allocation2 + $0x188] sm:$0xff]  ;;  %v204_v30 = vld [vmem:[#allocation2 + $0x80] sm:$0xff]  ;;  %v237_v32 = vld [vmem:[#allocation2 + $0x170] sm:$0xff]  ;;  %p685_p1 = pnand %p684_p0, %p798_p5 }
  0x21   : > { %260 = vmatpush.msra.mxu0 %v243_v20  ;;  %283 = vmatpush.msra.mxu1 %v244_v21  ;;  %v205_v31 = vld [vmem:[#allocation2 + $0x88] sm:$0xff]  ;;  %v238_v33 = vld [vmem:[#allocation2 + $0x178] sm:$0xff]  ;;  %v202_v34 = vld [vmem:[#allocation2 + $0x70] sm:$0xff]  ;;  %p690_p7 = por %p689_p4, %p688_p3 }
  0x22   : > { %306 = vmatpush.msra.mxu2 %v208_v22  ;;  %329 = vmatpush.msra.mxu3 %v209_v23  ;;  %v203_v35 = vld [vmem:[#allocation2 + $0x78] sm:$0xff]  ;;  %v235_v36 = vld [vmem:[#allocation2 + $0x160] sm:$0xff]  ;;  %v236_v37 = vld [vmem:[#allocation2 + $0x168] sm:$0xff]  ;;  %p686_p2 = pneg %p685_p1 }
  0x23   : > { %261 = vmatpush.msra.mxu0 %v241_v24  ;;  %284 = vmatpush.msra.mxu1 %v242_v25  ;;  %v200_v38 = vld [vmem:[#allocation2 + $0x60] sm:$0xff]  ;;  %v201_v39 = vld [vmem:[#allocation2 + $0x68] sm:$0xff]  ;;  %v233_v40 = vld [vmem:[#allocation2 + $0x150] sm:$0xff] }
  0x24   : > { %307 = vmatpush.msra.mxu2 %v206_v26  ;;  %330 = vmatpush.msra.mxu3 %v207_v27  ;;  %v234_v41 = vld [vmem:[#allocation2 + $0x158] sm:$0xff]  ;;  %v198_v42 = vld [vmem:[#allocation2 + $0x50] sm:$0xff]  ;;  %v231_v44 = vld [vmem:[#allocation2 + $0x140] sm:$0xff]  ;;  %p691_p8 = pnand %p690_p7, %p686_p2 }
  0x25   : > { %262 = vmatpush.msra.mxu0 %v239_v28  ;;  %285 = vmatpush.msra.mxu1 %v240_v29  ;;  %v199_v43 = vld [vmem:[#allocation2 + $0x58] sm:$0xff]  ;;  %v232_v45 = vld [vmem:[#allocation2 + $0x148] sm:$0xff]  ;;  %v196_v46 = vld [vmem:[#allocation2 + $0x40] sm:$0xff] }
  0x26   : > { %308 = vmatpush.msra.mxu2 %v204_v30  ;;  %331 = vmatpush.msra.mxu3 %v205_v31  ;;  %v197_v47 = vld [vmem:[#allocation2 + $0x48] sm:$0xff]  ;;  %v229_v48 = vld [vmem:[#allocation2 + $0x130] sm:$0xff]  ;;  %v230_v49 = vld [vmem:[#allocation2 + $0x138] sm:$0xff] }
  0x27   : > { %263 = vmatpush.msra.mxu0 %v237_v32  ;;  %286 = vmatpush.msra.mxu1 %v238_v33  ;;  %v194_v50 = vld [vmem:[#allocation2 + $0x30] sm:$0xff]  ;;  %v195_v51 = vld [vmem:[#allocation2 + $0x38] sm:$0xff]  ;;  %v227_v52 = vld [vmem:[#allocation2 + $0x120] sm:$0xff] }
  0x28   : > { %309 = vmatpush.msra.mxu2 %v202_v34  ;;  %332 = vmatpush.msra.mxu3 %v203_v35  ;;  %v228_v53 = vld [vmem:[#allocation2 + $0x128] sm:$0xff]  ;;  %v192_v54 = vld [vmem:[#allocation2 + $0x20] sm:$0xff]  ;;  %v225_v56 = vld [vmem:[#allocation2 + $0x110] sm:$0xff] }
  0x29   : > { %264 = vmatpush.msra.mxu0 %v235_v36  ;;  %287 = vmatpush.msra.mxu1 %v236_v37  ;;  %v193_v55 = vld [vmem:[#allocation2 + $0x28] sm:$0xff]  ;;  %v226_v57 = vld [vmem:[#allocation2 + $0x118] sm:$0xff]  ;;  %v190_v58 = vld [vmem:[#allocation2 + $0x10] sm:$0xff] }
  0x2a   : > { %310 = vmatpush.msra.mxu2 %v200_v38  ;;  %333 = vmatpush.msra.mxu3 %v201_v39  ;;  %v191_v59 = vld [vmem:[#allocation2 + $0x18] sm:$0xff]  ;;  %v223_v60 = vld [vmem:[#allocation2 + $0x100] sm:$0xff]  ;;  %v224_v61 = vld [vmem:[#allocation2 + $0x108] sm:$0xff] }
  0x2b   : > { %265 = vmatpush.msra.mxu0 %v233_v40  ;;  %288 = vmatpush.msra.mxu1 %v234_v41  ;;  %v188_v62 = vld [vmem:[#allocation2] sm:$0xff]  ;;  %v189_v63 = vld [vmem:[#allocation2 + $0x8] sm:$0xff]  ;;  %v380_v0 = vld [vmem:[#allocation2 + $0x2f0] sm:$0xff] }
  0x2c   : > { %311 = vmatpush.msra.mxu2 %v198_v42  ;;  %334 = vmatpush.msra.mxu3 %v199_v43  ;;  %v381_v1 = vld [vmem:[#allocation2 + $0x2f8] sm:$0xff]  ;;  %v378_v2 = vld [vmem:[#allocation2 + $0x2e0] sm:$0xff]  ;;  %v379_v3 = vld [vmem:[#allocation2 + $0x2e8] sm:$0xff] }
  0x2d   : > { %266 = vmatpush.msra.mxu0 %v231_v44  ;;  %289 = vmatpush.msra.mxu1 %v232_v45  ;;  %v376_v4 = vld [vmem:[#allocation2 + $0x2d0] sm:$0xff]  ;;  %v377_v5 = vld [vmem:[#allocation2 + $0x2d8] sm:$0xff]  ;;  %v374_v6 = vld [vmem:[#allocation2 + $0x2c0] sm:$0xff] }
  0x2e   : > { %312 = vmatpush.msra.mxu2 %v196_v46  ;;  %335 = vmatpush.msra.mxu3 %v197_v47  ;;  %v375_v7 = vld [vmem:[#allocation2 + $0x2c8] sm:$0xff]  ;;  %v372_v8 = vld [vmem:[#allocation2 + $0x2b0] sm:$0xff]  ;;  %v373_v9 = vld [vmem:[#allocation2 + $0x2b8] sm:$0xff] }
  0x2f   : > { %267 = vmatpush.msra.mxu0 %v229_v48  ;;  %290 = vmatpush.msra.mxu1 %v230_v49  ;;  %v370_v10 = vld [vmem:[#allocation2 + $0x2a0] sm:$0xff]  ;;  %v371_v11 = vld [vmem:[#allocation2 + $0x2a8] sm:$0xff]  ;;  %v368_v12 = vld [vmem:[#allocation2 + $0x290] sm:$0xff] }
  0x30   : > { %313 = vmatpush.msra.mxu2 %v194_v50  ;;  %336 = vmatpush.msra.mxu3 %v195_v51  ;;  %v369_v13 = vld [vmem:[#allocation2 + $0x298] sm:$0xff]  ;;  %v366_v14 = vld [vmem:[#allocation2 + $0x280] sm:$0xff]  ;;  %v367_v15 = vld [vmem:[#allocation2 + $0x288] sm:$0xff] }
  0x31   : > { %268 = vmatpush.msra.mxu0 %v227_v52  ;;  %291 = vmatpush.msra.mxu1 %v228_v53  ;;  %v220_v16 = vld [vmem:[%s823_s8 + $0x1] sm:$0xff]  ;;  %v364_v18 = vld [vmem:[#allocation2 + $0x270] sm:$0xff]  ;;  %v365_v19 = vld [vmem:[#allocation2 + $0x278] sm:$0xff] }
  0x32   : > { %314 = vmatpush.msra.mxu2 %v192_v54  ;;  %337 = vmatpush.msra.mxu3 %v193_v55  ;;  %v186_v17 = vld [vmem:[%s823_s8] sm:$0xff]  ;;  %v363_v21 = vld [vmem:[#allocation2 + $0x268] sm:$0xff]  ;;  %v360_v22 = vld [vmem:[#allocation2 + $0x250] sm:$0xff] }
  0x33   : > { %269 = vmatpush.msra.mxu0 %v225_v56  ;;  %292 = vmatpush.msra.mxu1 %v226_v57  ;;  %v362_v20 = vld [vmem:[#allocation2 + $0x260] sm:$0xff]  ;;  %v361_v23 = vld [vmem:[#allocation2 + $0x258] sm:$0xff]  ;;  %v359_v25 = vld [vmem:[#allocation2 + $0x248] sm:$0xff] }
  0x34   : > { %315 = vmatpush.msra.mxu2 %v190_v58  ;;  %338 = vmatpush.msra.mxu3 %v191_v59  ;;  %v358_v24 = vld [vmem:[#allocation2 + $0x240] sm:$0xff]  ;;  %v221_v26 = vld [vmem:[%s823_s8 + $0x9] sm:$0xff]  ;;  %v357_v29 = vld [vmem:[#allocation2 + $0x238] sm:$0xff] }
  0x35   : > { %270 = vmatpush.msra.mxu0 %v223_v60  ;;  %293 = vmatpush.msra.mxu1 %v224_v61  ;;  %v187_v27 = vld [vmem:[%s823_s8 + $0x8] sm:$0xff]  ;;  %v356_v28 = vld [vmem:[#allocation2 + $0x230] sm:$0xff]  ;;  %v354_v30 = vld [vmem:[#allocation2 + $0x220] sm:$0xff] }
  0x36   : > { %316 = vmatpush.msra.mxu2 %v188_v62  ;;  %339 = vmatpush.msra.mxu3 %v189_v63  ;;  %v355_v31 = vld [vmem:[#allocation2 + $0x228] sm:$0xff]  ;;  %v352_v32 = vld [vmem:[#allocation2 + $0x210] sm:$0xff]  ;;  %v353_v33 = vld [vmem:[#allocation2 + $0x218] sm:$0xff] }
  0x37   : > { %382 = vmatpush.msrb.mxu0 %v380_v0  ;;  %405 = vmatpush.msrb.mxu1 %v381_v1  ;;  %v350_v34 = vld [vmem:[#allocation2 + $0x200] sm:$0xff]  ;;  %v351_v35 = vld [vmem:[#allocation2 + $0x208] sm:$0xff] }
  0x38   : > { %550 = vmatpush.msrb.mxu2 %v380_v0  ;;  %566 = vmatpush.msrb.mxu3 %v381_v1  ;;  %v347_v36 = vld [vmem:[%s823_s8 + $0x2] sm:$0xff]  ;;  %v348_v37 = vld [vmem:[%s823_s8 + $0xa] sm:$0xff]  ;;  %v432_v44 = vld [vmem:[%s872_s2] sm:$0x3] }
  0x39   : > { %383 = vmatpush.msrb.mxu0 %v378_v2  ;;  %406 = vmatpush.msrb.mxu1 %v379_v3  ;;  %v434_v48 = vperm.slane %v432_v44, 0  ;;  %v435_v51 = vperm.slane %v432_v44, 1 }
  0x3a   : > { %551 = vmatpush.msrb.mxu2 %v378_v2  ;;  %567 = vmatpush.msrb.mxu3 %v379_v3 }
  0x3b   : > { %384 = vmatpush.msrb.mxu0 %v376_v4  ;;  %407 = vmatpush.msrb.mxu1 %v377_v5 }
  0x3c   : > { %552 = vmatpush.msrb.mxu2 %v376_v4  ;;  %568 = vmatpush.msrb.mxu3 %v377_v5 }
  0x3d   : > { %385 = vmatpush.msrb.mxu0 %v374_v6  ;;  %408 = vmatpush.msrb.mxu1 %v375_v7 }
  0x3e   : > { %553 = vmatpush.msrb.mxu2 %v374_v6  ;;  %569 = vmatpush.msrb.mxu3 %v375_v7 }
  0x3f   : > { %386 = vmatpush.msrb.mxu0 %v372_v8  ;;  %409 = vmatpush.msrb.mxu1 %v373_v9 }
  0x40   : > { %554 = vmatpush.msrb.mxu2 %v372_v8  ;;  %570 = vmatpush.msrb.mxu3 %v373_v9 }
  0x41   : > { %387 = vmatpush.msrb.mxu0 %v370_v10  ;;  %410 = vmatpush.msrb.mxu1 %v371_v11 }
  0x42   : > { %555 = vmatpush.msrb.mxu2 %v370_v10  ;;  %571 = vmatpush.msrb.mxu3 %v371_v11 }
  0x43   : > { %388 = vmatpush.msrb.mxu0 %v368_v12  ;;  %411 = vmatpush.msrb.mxu1 %v369_v13 }
  0x44   : > { %556 = vmatpush.msrb.mxu2 %v368_v12  ;;  %572 = vmatpush.msrb.mxu3 %v369_v13 }
  0x45   : > { %389 = vmatpush.msrb.mxu0 %v366_v14  ;;  %412 = vmatpush.msrb.mxu1 %v367_v15 }
  0x46   : > { %557 = vmatpush.msrb.mxu2 %v366_v14  ;;  %573 = vmatpush.msrb.mxu3 %v367_v15 }
  0x47   : > { %271 = vmatmul.f32.vlgmr.msra.gmra.mxu0 %v220_v16  ;;  %294 = vmatmul.f32.vlgmr.msra.gmra.mxu1 %v220_v16 }
  0x48   : > { %317 = vmatmul.f32.vlgmr.msra.gmra.mxu2 %v186_v17  ;;  %340 = vmatmul.f32.vlgmr.msra.gmra.mxu3 %v186_v17 }
  0x49   : > { %390 = vmatpush.msrb.mxu0 %v364_v18  ;;  %558 = vmatpush.msrb.mxu2 %v364_v18 }
  0x4a   : > { %413 = vmatpush.msrb.mxu1 %v365_v19  ;;  %574 = vmatpush.msrb.mxu3 %v365_v19 }
  0x4b   : > { %391 = vmatpush.msrb.mxu0 %v362_v20  ;;  %559 = vmatpush.msrb.mxu2 %v362_v20 }
  0x4c   : > { %414 = vmatpush.msrb.mxu1 %v363_v21  ;;  %575 = vmatpush.msrb.mxu3 %v363_v21 }
  0x4d   : > { %392 = vmatpush.msrb.mxu0 %v360_v22  ;;  %560 = vmatpush.msrb.mxu2 %v360_v22 }
  0x4e   : > { %415 = vmatpush.msrb.mxu1 %v361_v23  ;;  %576 = vmatpush.msrb.mxu3 %v361_v23 }
  0x4f   : > { %393 = vmatpush.msrb.mxu0 %v358_v24  ;;  %561 = vmatpush.msrb.mxu2 %v358_v24 }
  0x50   : > { %416 = vmatpush.msrb.mxu1 %v359_v25  ;;  %577 = vmatpush.msrb.mxu3 %v359_v25 }
  0x51   : > { %274 = vmatmul.f32.gmra.mxu0 %v221_v26  ;;  %297 = vmatmul.f32.gmra.mxu1 %v221_v26 }
  0x52   : > { %320 = vmatmul.f32.gmra.mxu2 %v187_v27  ;;  %343 = vmatmul.f32.gmra.mxu3 %v187_v27 }
  0x53   : > { %394 = vmatpush.msrb.mxu0 %v356_v28  ;;  %562 = vmatpush.msrb.mxu2 %v356_v28 }
  0x54   : > { %417 = vmatpush.msrb.mxu1 %v357_v29  ;;  %578 = vmatpush.msrb.mxu3 %v357_v29 }
  0x55   : > { %395 = vmatpush.msrb.mxu0 %v354_v30  ;;  %563 = vmatpush.msrb.mxu2 %v354_v30 }
  0x56   : > { %418 = vmatpush.msrb.mxu1 %v355_v31  ;;  %579 = vmatpush.msrb.mxu3 %v355_v31 }
  0x57   : > { %396 = vmatpush.msrb.mxu0 %v352_v32  ;;  %564 = vmatpush.msrb.mxu2 %v352_v32 }
  0x58   : > { %419 = vmatpush.msrb.mxu1 %v353_v33  ;;  %580 = vmatpush.msrb.mxu3 %v353_v33 }
  0x59   : > { %397 = vmatpush.msrb.mxu0 %v350_v34  ;;  %565 = vmatpush.msrb.mxu2 %v350_v34 }
  0x5a   : > { %420 = vmatpush.msrb.mxu1 %v351_v35  ;;  %581 = vmatpush.msrb.mxu3 %v351_v35 }
  0x5b   : > { %398 = vmatmul.f32.vlgmr.msrb.gmra.mxu0 %v347_v36  ;;  %401 = vmatmul.f32.vlgmr.msrb.gmra.mxu2 %v348_v37 }
  0x5c   : > { %421 = vmatmul.f32.vlgmr.msrb.gmra.mxu1 %v347_v36  ;;  %424 = vmatmul.f32.vlgmr.msrb.gmra.mxu3 %v348_v37 }
  0xc4   : > { %v272_v38 = vpop.f32.mrf.mxu0  ;;  %v295_v39 = vpop.f32.mrf.mxu1 }
  0xcb   : > { %v318_v40 = vpop.f32.mrf.mxu2  ;;  %v341_v41 = vpop.f32.mrf.mxu3 }
  0xcc   : > { %v319_v47 = vadd.f32 %v318_v40, %v272_v38  ;;  %v342_v49 = vadd.f32 %v341_v41, %v295_v39 }
  0xce   : > { %v275_v42 = vpop.f32.mrf.mxu0  ;;  %v298_v43 = vpop.f32.mrf.mxu1 }
  0xd5   : > { %v321_v45 = vpop.f32.mrf.mxu2  ;;  %v344_v46 = vpop.f32.mrf.mxu3 }
  0xd6   : > { %v322_v57 = vadd.f32 %v321_v45, %v275_v42  ;;  %v345_v58 = vadd.f32 %v344_v46, %v298_v43 }
  0xd8   : > { %v399_v50 = vpop.f32.mrf.mxu0 }
  0xd9   : > { %v428_v52 = vadd.f32 %v399_v50, %v319_v47  ;;  %v422_v53 = vpop.f32.mrf.mxu1 }
  0xda   : > { %v429_v54 = vadd.f32 %v422_v53, %v342_v49 }
  0xdb   : > { %v438_v55 = vadd.f32 %v434_v48, %v428_v52 }
  0xdc   : > { %v439_v56 = vadd.f32 %v435_v51, %v429_v54 }
  0xdd   : > { %442 = vst [vmem:[%s180_s26] sm:$0xff] %v438_v55 }
  0xde   : > { %443 = vst [vmem:[%s180_s26 + $0x8] sm:$0xff] %v439_v56  ;;  %v402_v59 = vpop.f32.mrf.mxu2 }
  0xdf   : > { %v430_v60 = vadd.f32 %v402_v59, %v322_v57  ;;  %v425_v61 = vpop.f32.mrf.mxu3 }
  0xe0   : > { %v431_v62 = vadd.f32 %v425_v61, %v345_v58 }
  0xe1   : > { %v440_v63 = vadd.f32 %v434_v48, %v430_v60 }
  0xe2   : > { %v441_v0 = vadd.f32 %v435_v51, %v431_v62 }
  0xe3   : > { %444 = vst [vmem:[%s180_s26 + $0x10] sm:$0xff] %v440_v63 }
  0xe4   : > { %445 = vst [vmem:[%s180_s26 + $0x18] sm:$0xff] %v441_v0 }
  0xe5   : > { %694 = shalt.err (!%p691_p8)
}
  0xe6   : > { %s738_s9 = smov 256   ;;  %s739_s10 = smov 16  }
  0xe7   : > { %587 = dma.vmem_to_hbm [thread:$0]  (%p798_p5), %s460_s27, 512, %s462_s28, %s447_s16, %s738_s9, %s738_s9, %s739_s10  }
  0xe8 PF: > { %p599_p9 = scmp.ge.s32.totalorder %s733_s15, 2  ;;  %s476_s11 = sand.u32 1, %s721_s12  }
  0xe9   : > { %s477_s17 = scalar_lea.sflag [#allocation4], %s476_s11 }
  0xea   : > { %p594_p10 = pnand %p599_p9, %p802_p6 }
  0xec   : > { %p595_p11 = pneg %p594_p10 }
  0xee   : > { %716 = dma.done.wait (%p595_p11), %s477_s17, 512  }
  0xef   : > { %718 = vsyncadd (%p595_p11), %s477_s17, 4294966784  ;;  %p14_p12 = scmp.ge.s32.totalorder %s785_s18, 4   ;;  %s876_s12 = smov %s725_s13 }
  0xf0   : > { %s877_s13 = smov %s729_s14  ;;  %s878_s14 = smov %s796_s21 }
  0xf1   : > { %s879_s15 = smov %s785_s18  ;;  %16 = sbr.rel (!%p14_p12) target bundleno = 4 (0x4), region = 74 }
  0xf6   :  { %483 = vsyncpa [#allocation3], 1 }
  0xf7   :  { %485 = vsyncpa [#allocation3 + $0x1], 1 }
  0xf8   :  { %486 = vsyncpa [#allocation4], 1 }
  0xf9   :  { %488 = vsyncpa [#allocation4 + $0x1], 1 }

</bundles_post_ra>
